<compile_context>
chip_gen: v7x
topology: tpu7x:2x2x1
jax: 0.10.0
libtpu: 0.0.40
codegen_flags: <defaults>
</compile_context>

<pallas_src>
import math
from functools import partial

import jax
import jax.numpy as jnp
from jax import lax
from jax.experimental import pallas as pl
from jax.experimental.pallas import tpu as pltpu

# ---------------------------------------------------------------------------
# Small BERT-like config (shapes chosen to be lane/sublane friendly)
# ---------------------------------------------------------------------------
HIDDEN = 256
N_HEADS = 2
HEAD_DIM = HIDDEN // N_HEADS          # 128 -> lane-aligned head slices
INTERMEDIATE = 512
N_LAYERS = 2
VOCAB = 128
MAX_POS = 64
LABELS = 8
LN_EPS = 1e-12

_PARALLEL = pltpu.CompilerParams(dimension_semantics=("parallel",))


# ---------------------------------------------------------------------------
# Shared math helpers (used both inside kernels and in the pure-JAX reference)
# ---------------------------------------------------------------------------
def _layer_norm(x, g, b, eps=LN_EPS):
    mu = jnp.mean(x, axis=-1, keepdims=True)
    var = jnp.mean(jnp.square(x - mu), axis=-1, keepdims=True)
    return (x - mu) * lax.rsqrt(var + eps) * g + b


def _gelu(x):
    # TODO(synk): original BERT uses exact erf-GELU; tanh approximation used
    # here (EUP-friendly); the reference below uses the identical formula.
    return 0.5 * x * (1.0 + jnp.tanh(0.7978845608028654 * (x + 0.044715 * x * x * x)))


# ---------------------------------------------------------------------------
# Pallas kernels
# ---------------------------------------------------------------------------
def _embed_ln_kernel(we_ref, pe_ref, te_ref, g_ref, b_ref, o_ref):
    """word-emb rows + position emb + token-type(0) emb -> LayerNorm."""
    x = we_ref[0] + pe_ref[...] + te_ref[...]            # (S, H) f32
    o_ref[0] = _layer_norm(x, g_ref[...], b_ref[...])


def _encoder_layer_kernel(x_ref, mask_ref,
                          wq_ref, bq_ref, wk_ref, bk_ref, wv_ref, bv_ref,
                          wo_ref, bo_ref, g1_ref, be1_ref,
                          w1_ref, b1_ref, w2_ref, b2_ref, g2_ref, be2_ref,
                          o_ref, *, n_heads, head_dim):
    """One fused transformer encoder layer for a single batch element."""
    x = x_ref[0]                                          # (S, H) f32
    xb = x.astype(jnp.bfloat16)
    mask_bias = mask_ref[0]                               # (1, S) f32

    q = jnp.dot(xb, wq_ref[...], preferred_element_type=jnp.float32) + bq_ref[...]
    k = jnp.dot(xb, wk_ref[...], preferred_element_type=jnp.float32) + bk_ref[...]
    v = jnp.dot(xb, wv_ref[...], preferred_element_type=jnp.float32) + bv_ref[...]

    scale = 1.0 / math.sqrt(head_dim)
    ctx_heads = []
    for h in range(n_heads):                              # static unroll, lane-aligned
        sl = slice(h * head_dim, (h + 1) * head_dim)
        qh = q[:, sl].astype(jnp.bfloat16)                # (S, dh)
        kh = k[:, sl].astype(jnp.bfloat16)
        vh = v[:, sl].astype(jnp.bfloat16)
        scores = lax.dot_general(qh, kh, (((1,), (1,)), ((), ())),
                                 preferred_element_type=jnp.float32)
        scores = scores * scale + mask_bias               # (S, S)
        m = jnp.max(scores, axis=-1, keepdims=True)
        p = jnp.exp(scores - m)
        p = p / jnp.sum(p, axis=-1, keepdims=True)
        ctx_heads.append(jnp.dot(p.astype(jnp.bfloat16), vh,
                                 preferred_element_type=jnp.float32))
    ctx = jnp.concatenate(ctx_heads, axis=-1)             # (S, H)

    attn_out = (jnp.dot(ctx.astype(jnp.bfloat16), wo_ref[...],
                        preferred_element_type=jnp.float32) + bo_ref[...])
    x1 = _layer_norm(x + attn_out, g1_ref[...], be1_ref[...])

    h1 = _gelu(jnp.dot(x1.astype(jnp.bfloat16), w1_ref[...],
                       preferred_element_type=jnp.float32) + b1_ref[...])
    ffn_out = (jnp.dot(h1.astype(jnp.bfloat16), w2_ref[...],
                       preferred_element_type=jnp.float32) + b2_ref[...])
    o_ref[0] = _layer_norm(x1 + ffn_out, g2_ref[...], be2_ref[...])


def _head_kernel(x_ref, w_ref, b_ref, o_ref):
    """Lane-dense classifier head: (TM, H) @ (H, 128-padded labels)."""
    o_ref[...] = (jnp.dot(x_ref[...].astype(jnp.bfloat16), w_ref[...],
                          preferred_element_type=jnp.float32) + b_ref[...])


# ---------------------------------------------------------------------------
# pallas_call wrappers
# ---------------------------------------------------------------------------
def embed_layernorm(word_emb_rows, pos_emb, type_row, g, b):
    B, S, H = word_emb_rows.shape
    return pl.pallas_call(
        _embed_ln_kernel,
        out_shape=jax.ShapeDtypeStruct((B, S, H), jnp.float32),
        grid=(B,),
        in_specs=[
            pl.BlockSpec((1, S, H), lambda i: (i, 0, 0)),
            pl.BlockSpec((S, H), lambda i: (0, 0)),
            pl.BlockSpec((1, H), lambda i: (0, 0)),
            pl.BlockSpec((1, H), lambda i: (0, 0)),
            pl.BlockSpec((1, H), lambda i: (0, 0)),
        ],
        out_specs=pl.BlockSpec((1, S, H), lambda i: (i, 0, 0)),
        compiler_params=_PARALLEL,
    )(word_emb_rows, pos_emb, type_row, g, b)


def encoder_layer(x, mask_bias, lp, *, n_heads, head_dim):
    B, S, H = x.shape
    I = lp["w1"].shape[1]

    def full(shape):
        nd = len(shape)
        return pl.BlockSpec(shape, lambda i, _nd=nd: (0,) * _nd)

    kernel = partial(_encoder_layer_kernel, n_heads=n_heads, head_dim=head_dim)
    return pl.pallas_call(
        kernel,
        out_shape=jax.ShapeDtypeStruct((B, S, H), jnp.float32),
        grid=(B,),
        in_specs=[
            pl.BlockSpec((1, S, H), lambda i: (i, 0, 0)),   # x
            pl.BlockSpec((1, 1, S), lambda i: (i, 0, 0)),   # attention mask bias
            full((H, H)), full((1, H)),                     # wq, bq
            full((H, H)), full((1, H)),                     # wk, bk
            full((H, H)), full((1, H)),                     # wv, bv
            full((H, H)), full((1, H)),                     # wo, bo
            full((1, H)), full((1, H)),                     # ln1 gamma, beta
            full((H, I)), full((1, I)),                     # w1, b1
            full((I, H)), full((1, H)),                     # w2, b2
            full((1, H)), full((1, H)),                     # ln2 gamma, beta
        ],
        out_specs=pl.BlockSpec((1, S, H), lambda i: (i, 0, 0)),
        compiler_params=_PARALLEL,
    )(x, mask_bias,
      lp["wq"], lp["bq"], lp["wk"], lp["bk"], lp["wv"], lp["bv"],
      lp["wo"], lp["bo"], lp["ln1_g"], lp["ln1_b"],
      lp["w1"], lp["b1"], lp["w2"], lp["b2"], lp["ln2_g"], lp["ln2_b"])


def classifier_head(x2d, w_pad, b_pad):
    M, K = x2d.shape
    N = w_pad.shape[1]                      # multiple of 128 (lane-dense)
    tm = 256 if M % 256 == 0 else M
    return pl.pallas_call(
        _head_kernel,
        out_shape=jax.ShapeDtypeStruct((M, N), jnp.float32),
        grid=(M // tm,),
        in_specs=[
            pl.BlockSpec((tm, K), lambda i: (i, 0)),
            pl.BlockSpec((K, N), lambda i: (0, 0)),
            pl.BlockSpec((1, N), lambda i: (0, 0)),
        ],
        out_specs=pl.BlockSpec((tm, N), lambda i: (i, 0)),
        compiler_params=_PARALLEL,
    )(x2d, w_pad, b_pad)


def bert_tagger_forward(words, params):
    """words: (B, S) int32 word ids (0 = padding). Returns (B, S, labels)."""
    B, S = words.shape
    mask = (words > 0).astype(jnp.float32)
    mask_bias = ((1.0 - mask) * -10000.0)[:, None, :]       # (B, 1, S)

    # Embedding gather kept in XLA glue (tiny here).
    we = jnp.take(params["word_emb"], words, axis=0)        # (B, S, H)
    pe = params["pos_emb"][:S]                              # (S, H)
    te = params["type_emb"][0:1]                            # (1, H) token-type 0
    x = embed_layernorm(we, pe, te, params["emb_ln_g"], params["emb_ln_b"])

    for lp in params["layers"]:
        x = encoder_layer(x, mask_bias, lp,
                          n_heads=params["n_heads"], head_dim=params["head_dim"])

    # dropout is identity in eval mode
    H = x.shape[-1]
    logits_pad = classifier_head(x.reshape(B * S, H),
                                 params["out_w_pad"], params["out_b_pad"])
    n_labels = params["n_labels"]
    return logits_pad[:, :n_labels].reshape(B, S, n_labels)


# ---------------------------------------------------------------------------
# Deterministic synthetic parameter init (mirrors BertModel + Linear shapes)
# ---------------------------------------------------------------------------
def init_params(key, *, vocab, max_pos, hidden, n_heads, intermediate,
                n_layers, n_labels):
    def nrm(k, shape, scale=0.02, dtype=jnp.float32):
        return (scale * jax.random.normal(k, shape, jnp.float32)).astype(dtype)

    keys = jax.random.split(key, 5 + n_layers)
    k_we, k_pe, k_te, k_eln, k_head = keys[:5]
    k_eln_g, k_eln_b = jax.random.split(k_eln)

    H, I = hidden, intermediate
    layers = []
    for li in range(n_layers):
        lk = jax.random.split(keys[5 + li], 16)
        layers.append({
            "wq": nrm(lk[0], (H, H), dtype=jnp.bfloat16), "bq": nrm(lk[1], (1, H)),
            "wk": nrm(lk[2], (H, H), dtype=jnp.bfloat16), "bk": nrm(lk[3], (1, H)),
            "wv": nrm(lk[4], (H, H), dtype=jnp.bfloat16), "bv": nrm(lk[5], (1, H)),
            "wo": nrm(lk[6], (H, H), dtype=jnp.bfloat16), "bo": nrm(lk[7], (1, H)),
            "ln1_g": 1.0 + nrm(lk[8], (1, H)), "ln1_b": nrm(lk[9], (1, H)),
            "w1": nrm(lk[10], (H, I), dtype=jnp.bfloat16), "b1": nrm(lk[11], (1, I)),
            "w2": nrm(lk[12], (I, H), dtype=jnp.bfloat16), "b2": nrm(lk[13], (1, H)),
            "ln2_g": 1.0 + nrm(lk[14], (1, H)), "ln2_b": nrm(lk[15], (1, H)),
        })

    kw, kb = jax.random.split(k_head)
    out_w = nrm(kw, (H, n_labels))
    out_b = nrm(kb, (1, n_labels))
    n_pad = max(128, ((n_labels + 127) // 128) * 128)
    out_w_pad = (jnp.zeros((H, n_pad), jnp.float32)
                 .at[:, :n_labels].set(out_w).astype(jnp.bfloat16))
    out_b_pad = jnp.zeros((1, n_pad), jnp.float32).at[:, :n_labels].set(out_b)

    return {
        "word_emb": nrm(k_we, (vocab, H)),
        "pos_emb": nrm(k_pe, (max_pos, H)),
        "type_emb": nrm(k_te, (2, H)),
        "emb_ln_g": 1.0 + nrm(k_eln_g, (1, H)),
        "emb_ln_b": nrm(k_eln_b, (1, H)),
        "layers": layers,
        "out_w_pad": out_w_pad,
        "out_b_pad": out_b_pad,
        "out_w": out_w.astype(jnp.bfloat16),   # for the reference path
        "out_b": out_b,
        "n_heads": n_heads,
        "head_dim": H // n_heads,
        "n_labels": n_labels,
    }


# ---------------------------------------------------------------------------
# Pure-JAX reference (same bf16-matmul / f32-accumulate math)
# ---------------------------------------------------------------------------
def _forward_ref(words, params):
    B, S = words.shape
    H = params["word_emb"].shape[1]
    nh, dh = params["n_heads"], params["head_dim"]
    mask = (words > 0).astype(jnp.float32)
    bias = ((1.0 - mask) * -10000.0)[:, None, None, :]           # (B,1,1,S)

    x = (jnp.take(params["word_emb"], words, axis=0)
         + params["pos_emb"][:S][None, :, :]
         + params["type_emb"][0][None, None, :])
    x = _layer_norm(x, params["emb_ln_g"][0], params["emb_ln_b"][0])

    scale = 1.0 / math.sqrt(dh)
    for lp in params["layers"]:
        xb = x.astype(jnp.bfloat16)
        q = jnp.einsum("bsh,hd->bsd", xb, lp["wq"],
                       preferred_element_type=jnp.float32) + lp["bq"][0]
        k = jnp.einsum("bsh,hd->bsd", xb, lp["wk"],
                       preferred_element_type=jnp.float32) + lp["bk"][0]
        v = jnp.einsum("bsh,hd->bsd", xb, lp["wv"],
                       preferred_element_type=jnp.float32) + lp["bv"][0]
        q = q.reshape(B, S, nh, dh)
        k = k.reshape(B, S, nh, dh)
        v = v.reshape(B, S, nh, dh)
        scores = (jnp.einsum("bqnd,bknd->bnqk", q.astype(jnp.bfloat16),
                             k.astype(jnp.bfloat16),
                             preferred_element_type=jnp.float32) * scale + bias)
        p = jax.nn.softmax(scores, axis=-1)
        ctx = jnp.einsum("bnqk,bknd->bqnd", p.astype(jnp.bfloat16),
                         v.astype(jnp.bfloat16),
                         preferred_element_type=jnp.float32).reshape(B, S, H)
        attn = (jnp.einsum("bsh,hd->bsd", ctx.astype(jnp.bfloat16), lp["wo"],
                           preferred_element_type=jnp.float32) + lp["bo"][0])
        x1 = _layer_norm(x + attn, lp["ln1_g"][0], lp["ln1_b"][0])
        h1 = _gelu(jnp.einsum("bsh,hi->bsi", x1.astype(jnp.bfloat16), lp["w1"],
                              preferred_element_type=jnp.float32) + lp["b1"][0])
        ffn = (jnp.einsum("bsi,ih->bsh", h1.astype(jnp.bfloat16), lp["w2"],
                          preferred_element_type=jnp.float32) + lp["b2"][0])
        x = _layer_norm(x1 + ffn, lp["ln2_g"][0], lp["ln2_b"][0])

    return (jnp.einsum("bsh,hl->bsl", x.astype(jnp.bfloat16), params["out_w"],
                       preferred_element_type=jnp.float32) + params["out_b"][0])


# ---------------------------------------------------------------------------
if __name__ == "__main__":
    B, S = 2, 8
    key = jax.random.PRNGKey(0)
    k_params, k_words = jax.random.split(key)
    params = init_params(k_params, vocab=VOCAB, max_pos=MAX_POS, hidden=HIDDEN,
                         n_heads=N_HEADS, intermediate=INTERMEDIATE,
                         n_layers=N_LAYERS, n_labels=LABELS)

    words = jax.random.randint(k_words, (B, S), 1, VOCAB, dtype=jnp.int32)
    words = words.at[:, -2:].set(0)   # trailing padding tokens (id 0) -> masked

    out = jax.block_until_ready(bert_tagger_forward(words, params))
    assert out.shape == (B, S, LABELS), out.shape

    ref = jax.block_until_ready(_forward_ref(words, params))
    max_err = float(jnp.max(jnp.abs(out - ref)))
    assert jnp.allclose(out, ref, rtol=2e-2, atol=2e-2), max_err

    print("KERNEL_OK")
</pallas_src>

<mosaic_0001>
module attributes {stable_mosaic.version = 11 : i64} {
  func.func @_embed_ln_kernel(%arg0: i32, %arg1: memref<1x8x256xf32, #tpu.memory_space<vmem>>, %arg2: memref<8x256xf32, #tpu.memory_space<vmem>>, %arg3: memref<1x256xf32, #tpu.memory_space<vmem>>, %arg4: memref<1x256xf32, #tpu.memory_space<vmem>>, %arg5: memref<1x256xf32, #tpu.memory_space<vmem>>, %arg6: memref<1x8x256xf32, #tpu.memory_space<vmem>>) attributes {dimension_semantics = [#tpu.dimension_semantics<parallel>], iteration_bounds = array<i64: 2>, scalar_prefetch = 0 : i64, scratch_operands = 0 : i64, tpu.core_type = #tpu.core_type<tc>, window_params = [{transform_indices = @transform_0, window_bounds = array<i64: 1, 8, 256>}, {pipeline_mode = #tpu.pipeline_mode<synchronous>, transform_indices = @transform_1, window_bounds = array<i64: 8, 256>}, {pipeline_mode = #tpu.pipeline_mode<synchronous>, transform_indices = @transform_2, window_bounds = array<i64: 1, 256>}, {pipeline_mode = #tpu.pipeline_mode<synchronous>, transform_indices = @transform_3, window_bounds = array<i64: 1, 256>}, {pipeline_mode = #tpu.pipeline_mode<synchronous>, transform_indices = @transform_4, window_bounds = array<i64: 1, 256>}, {transform_indices = @transform_5, window_bounds = array<i64: 1, 8, 256>}]} {
    %c0 = arith.constant 0 : index
    %c0_0 = arith.constant 0 : index
    %c0_1 = arith.constant 0 : index
    %0 = vector.load %arg1[%c0, %c0_0, %c0_1] : memref<1x8x256xf32, #tpu.memory_space<vmem>>, vector<1x8x256xf32>
    %1 = vector.shape_cast %0 : vector<1x8x256xf32> to vector<8x256xf32>
    %c0_2 = arith.constant 0 : index
    %c0_3 = arith.constant 0 : index
    %2 = vector.load %arg2[%c0_2, %c0_3] : memref<8x256xf32, #tpu.memory_space<vmem>>, vector<8x256xf32>
    %3 = arith.addf %1, %2 : vector<8x256xf32>
    %c0_4 = arith.constant 0 : index
    %c0_5 = arith.constant 0 : index
    %4 = vector.load %arg3[%c0_4, %c0_5] : memref<1x256xf32, #tpu.memory_space<vmem>>, vector<1x256xf32>
    %5 = vector.broadcast %4 : vector<1x256xf32> to vector<8x256xf32>
    %6 = arith.addf %3, %5 : vector<8x256xf32>
    %c0_6 = arith.constant 0 : index
    %c0_7 = arith.constant 0 : index
    %7 = vector.load %arg4[%c0_6, %c0_7] : memref<1x256xf32, #tpu.memory_space<vmem>>, vector<1x256xf32>
    %c0_8 = arith.constant 0 : index
    %c0_9 = arith.constant 0 : index
    %8 = vector.load %arg5[%c0_8, %c0_9] : memref<1x256xf32, #tpu.memory_space<vmem>>, vector<1x256xf32>
    %cst = arith.constant dense<0.000000e+00> : vector<8xf32>
    %9 = vector.multi_reduction <add>, %6, %cst [1] : vector<8x256xf32> to vector<8xf32>
    %10 = vector.shape_cast %9 : vector<8xf32> to vector<8x1xf32>
    %cst_10 = arith.constant 2.560000e+02 : f32
    %11 = vector.broadcast %cst_10 : f32 to vector<8x1xf32>
    %12 = arith.divf %10, %11 : vector<8x1xf32>
    %13 = vector.broadcast %12 : vector<8x1xf32> to vector<8x256xf32>
    %14 = arith.subf %6, %13 : vector<8x256xf32>
    %15 = arith.mulf %14, %14 : vector<8x256xf32>
    %cst_11 = arith.constant dense<0.000000e+00> : vector<8xf32>
    %16 = vector.multi_reduction <add>, %15, %cst_11 [1] : vector<8x256xf32> to vector<8xf32>
    %17 = vector.shape_cast %16 : vector<8xf32> to vector<8x1xf32>
    %cst_12 = arith.constant 2.560000e+02 : f32
    %18 = vector.broadcast %cst_12 : f32 to vector<8x1xf32>
    %19 = arith.divf %17, %18 : vector<8x1xf32>
    %20 = vector.broadcast %12 : vector<8x1xf32> to vector<8x256xf32>
    %21 = arith.subf %6, %20 : vector<8x256xf32>
    %cst_13 = arith.constant 9.99999996E-13 : f32
    %22 = vector.broadcast %cst_13 : f32 to vector<8x1xf32>
    %23 = arith.addf %19, %22 : vector<8x1xf32>
    %24 = math.rsqrt %23 : vector<8x1xf32>
    %25 = vector.broadcast %24 : vector<8x1xf32> to vector<8x256xf32>
    %26 = arith.mulf %21, %25 : vector<8x256xf32>
    %27 = vector.broadcast %7 : vector<1x256xf32> to vector<8x256xf32>
    %28 = arith.mulf %26, %27 : vector<8x256xf32>
    %29 = vector.broadcast %8 : vector<1x256xf32> to vector<8x256xf32>
    %30 = arith.addf %28, %29 : vector<8x256xf32>
    %c0_14 = arith.constant 0 : index
    %c0_15 = arith.constant 0 : index
    %c0_16 = arith.constant 0 : index
    %31 = vector.load %arg6[%c0_14, %c0_15, %c0_16] : memref<1x8x256xf32, #tpu.memory_space<vmem>>, vector<1x8x256xf32>
    %32 = vector.shape_cast %31 : vector<1x8x256xf32> to vector<8x256xf32>
    %33 = vector.shape_cast %30 : vector<8x256xf32> to vector<1x8x256xf32>
    tpu.vector_store %arg6[%c0_14, %c0_15, %c0_16], %33 {strides = array<i32>} : memref<1x8x256xf32, #tpu.memory_space<vmem>>, vector<1x8x256xf32>,
    return
  }
  func.func @transform_0(%arg0: i32) -> (i32, i32, i32) {
    %c0_i32 = arith.constant 0 : i32
    %c0_i32_0 = arith.constant 0 : i32
    %c0_i32_1 = arith.constant 0 : i32
    return %arg0, %c0_i32, %c0_i32_0 : i32, i32, i32
  }
  func.func @transform_1(%arg0: i32) -> (i32, i32) {
    %c0_i32 = arith.constant 0 : i32
    %c0_i32_0 = arith.constant 0 : i32
    %c0_i32_1 = arith.constant 0 : i32
    return %c0_i32, %c0_i32_0 : i32, i32
  }
  func.func @transform_2(%arg0: i32) -> (i32, i32) {
    %c0_i32 = arith.constant 0 : i32
    %c0_i32_0 = arith.constant 0 : i32
    %c0_i32_1 = arith.constant 0 : i32
    return %c0_i32, %c0_i32_0 : i32, i32
  }
  func.func @transform_3(%arg0: i32) -> (i32, i32) {
    %c0_i32 = arith.constant 0 : i32
    %c0_i32_0 = arith.constant 0 : i32
    %c0_i32_1 = arith.constant 0 : i32
    return %c0_i32, %c0_i32_0 : i32, i32
  }
  func.func @transform_4(%arg0: i32) -> (i32, i32) {
    %c0_i32 = arith.constant 0 : i32
    %c0_i32_0 = arith.constant 0 : i32
    %c0_i32_1 = arith.constant 0 : i32
    return %c0_i32, %c0_i32_0 : i32, i32
  }
  func.func @transform_5(%arg0: i32) -> (i32, i32, i32) {
    %c0_i32 = arith.constant 0 : i32
    %c0_i32_0 = arith.constant 0 : i32
    %c0_i32_1 = arith.constant 0 : i32
    return %arg0, %c0_i32, %c0_i32_0 : i32, i32, i32
  }
}

</mosaic_0001>

<bundles_post_ra>
// kernel: tpu_custom_call.1
= control target key start
LH: loop header
LB: loop body
LE: loop exit
PB: predicated region body
PF: predicated region fallthrough
CT: control target
= control target key end

     0   :  { %10 = vsyncpa [#allocation3], 0  ;;  %s870_s0 = inlined_call_operand.hbm [shape: f32[2,8,256], index: 0, kind: input, shape index: {}]   ;;  %s871_s1 = inlined_call_operand.hbm [shape: f32[8,256], index: 1, kind: input, shape index: {}]   ;;  %s872_s2 = inlined_call_operand.vmem [shape: f32[1,256], index: 2, kind: input, shape index: {}]   ;;  %s873_s3 = inlined_call_operand.vmem [shape: f32[1,256], index: 3, kind: input, shape index: {}]   ;;  %s874_s4 = inlined_call_operand.vmem [shape: f32[1,256], index: 4, kind: input, shape index: {}]   ;;  %s875_s5 = inlined_call_operand.hbm [shape: f32[2,8,256], index: 5, kind: output, shape index: {}]  }
   0x1   :  { %12 = vsyncpa [#allocation3 + $0x1], 0 }
   0x2   :  { %13 = vsyncpa [#allocation6], 0 }
   0x3   :  { %14 = vsyncpa [#allocation4], 0 }
   0x4   :  { %16 = vsyncpa [#allocation4 + $0x1], 0  ;;  %s656_s18 = smov 0   ;;  %s658_s19 = smov 0  }
   0x5   :  { %s660_s20 = smov 0   ;;  %s662_s21 = smov 0  }
   0x6 LB: > { %s677_s22 = sadd.s32 4294967295, %s621_s21   ;;  %s416_s23 = sadd.s32 4294967294, %s621_s21   ;;  %s621_s21 = sphi %s662_s21, %s899_s21   ;;  %s617_s20 = sphi %s660_s20, %s898_s20   ;;  %s613_s19 = sphi %s658_s19, %s897_s19   ;;  %s609_s18 = sphi %s656_s18, %s896_s18  }
   0x7   : > { %p42_p0 = scmp.ne.s32.totalorder %s613_s19, %s609_s18  ;;  %p876_p1 = scmp.eq.s32.totalorder %s677_s22, 0 }
   0x8   : > { %p156_p3 = scmp.eq.s32.totalorder %s416_s23, 1  ;;  %p417_p5 = scmp.ge.s32.totalorder %s621_s21, 1 }
   0x9   : > { %p686_p4 = por %p876_p1, %p42_p0  ;;  %p163_p7 = scmp.lt.s32.totalorder %s621_s21, 3 }
   0xa   : > { %p691_p6 = por %p156_p3, %p42_p0  ;;  %s623_s27 = smov [#allocation5]  }
   0xb   : > { %s879_s24 = scalar_select %p686_p4, 1, 0 }
   0xc   : > { %s880_s25 = scalar_select %p691_p6, 1, 0 }
   0xd   : > { %p696_p8 = pnand %p417_p5, %p163_p7  ;;  %s176_s28 = sshll.u32 %s623_s27, 4  ;;  %s177_s28 = int_to_ptr.vmem [resolvable:$true] %s176_s28 }
   0xe   : > { %s704_s29 = sadd.s32 1, %s621_s21   ;;  %s29_s8 = sadd.s32 1, %s617_s20 }
   0xf   : > { %s881_s26 = scalar_select %p696_p8, 1, 0 }
  0x10   : > { %p442_p10 = pneg %p696_p8  ;;  %s26_s6 = ssub.s32 %s621_s21, %s704_s29 }
  0x11   : > { %p714_p12 = scmp.eq.s32.totalorder %s26_s6, 0  ;;  %s493_s11 = scalar_lea.hbm %s871_s1, 256 }
  0x12   : > { %p708_p11 = pnand %p442_p10, %p876_p1  ;;  %p494_p0 = scmp.ne.s32.totalorder %s871_s1, %s493_s11 }
  0x13   : > { %s883_s7 = scalar_select %p714_p12, 1, 0 }
  0x14   : > { %p495_p3 = pneg %p708_p11  ;;  %p500_p10 = scmp.lt.u32.totalorder %s493_s11, %s871_s1 }
  0x16   : > { %p496_p5 = pnand %p495_p3, %p494_p0 }
  0x18   : > { %p497_p7 = pneg %p496_p5 }
  0x1a   : > { %p502_p9 = pnand %p500_p10, %p497_p7 }
  0x1c   : > { %505 = shalt.err (!%p502_p9)
}
  0x1d   : > { %s506_s16 = scalar_lea.vmem %s177_s28, 256  ;;  %p514_p6 = scmp.lt.s32.totalorder %s177_s28, %s177_s28 }
  0x1e   : > { %p507_p1 = scmp.ne.s32.totalorder %s177_s28, %s506_s16  ;;  %p515_p4 = scmp.lt.s32.totalorder %s506_s16, %s506_s16 }
  0x20   : > { %p509_p2 = pnand %p507_p1, %p495_p3  ;;  %p516_p8 = por %p515_p4, %p514_p6 }
  0x22   : > { %p510_p13 = pneg %p509_p2 }
  0x24   : > { %p517_p12 = pnand %p516_p8, %p510_p13 }
  0x26   : > { %520 = shalt.err (!%p517_p12)
}
  0x27   : > { %445 = dma.hbm_to_vmem [thread:$0]  (!%p708_p11), %s871_s1, 256, %s177_s28, [#allocation6]  }
  0x28   : > { %p884_p1 = scmp.ne.s32.totalorder %s883_s7, 0  ;;  %p37_p2 = scmp.eq.s32.totalorder %s621_s21, 0 }
  0x29   : > { %p885_p4 = scmp.ne.s32.totalorder %s617_s20, %s613_s19  ;;  %p886_p6 = scmp.eq.s32.totalorder %s677_s22, 1 }
  0x2a   : > { %s740_s27 = scalar_select %p884_p1, %s617_s20, %s29_s8  }
  0x2b   : > { %p748_p8 = por %p886_p6, %p885_p4  ;;  %p455_p9 = scmp.lt.s32.totalorder %s621_s21, 2 }
  0x2c   : > { %s196_s6 = sand.u32 1, %s617_s20   ;;  %p888_p12 = pmov %p885_p4 }
  0x2d   : > { %s420_s9 = sshll.u32 %s196_s6, 4  ;;  %s432_s10 = sshll.u32 %s621_s21, 8 }
  0x2e   : > { %p38_p13 = por %p37_p2, %p888_p12  ;;  %s761_s28 = scalar_lea.hbm %s870_s0, %s432_s10 }
  0x2f   : > { %s200_s7 = scalar_lea.vmem [#allocation2], %s420_s9  ;;  %s197_s14 = scalar_lea.sflag [#allocation3], %s196_s6 }
  0x30   : > { %s208_s8 = sshll.u32 %s200_s7, 4  ;;  %p763_p11 = pnand %p455_p9, %p38_p13  ;;  %s767_s8 = int_to_ptr.vmem [resolvable:$true] %s208_s8 }
  0x31   : > { %s521_s15 = scalar_lea.hbm %s761_s28, 256  ;;  %s526_s23 = scalar_lea.hbm %s870_s0, 512 }
  0x32   : > { %p522_p0 = scmp.ne.s32.totalorder %s761_s28, %s521_s15  ;;  %p523_p3 = pneg %p763_p11 }
  0x33   : > { %p527_p10 = scmp.lt.u32.totalorder %s761_s28, %s870_s0  ;;  %p528_p1 = scmp.lt.u32.totalorder %s526_s23, %s521_s15 }
  0x34   : > { %p524_p5 = pnand %p523_p3, %p522_p0  ;;  %p530_p4 = scmp.lt.u32.totalorder %s521_s15, %s761_s28 }
  0x35   : > { %p529_p2 = por %p528_p1, %p527_p10 }
  0x36   : > { %p525_p7 = pneg %p524_p5 }
  0x37   : > { %p531_p6 = por %p530_p4, %p529_p2 }
  0x39   : > { %p532_p9 = pnand %p531_p6, %p525_p7 }
  0x3b   : > { %535 = shalt.err (!%p532_p9)
}
  0x3c   : > { %s536_s6 = scalar_lea.vmem %s767_s8, 256  ;;  %s624_s11 = smov [#allocation2]  }
  0x3d   : > { %p537_p12 = scmp.ne.s32.totalorder %s767_s8, %s536_s6  ;;  %s541_s12 = sshll.u32 %s624_s11, 4  ;;  %s542_s12 = int_to_ptr.vmem [resolvable:$false] %s541_s12 }
  0x3e   : > { %s543_s7 = scalar_lea.vmem %s542_s12, 512  ;;  %p544_p5 = scmp.lt.s32.totalorder %s767_s8, %s542_s12 }
  0x3f   : > { %p539_p13 = pnand %p537_p12, %p523_p3  ;;  %p545_p10 = scmp.lt.s32.totalorder %s543_s7, %s536_s6 }
  0x41   : > { %p540_p0 = pneg %p539_p13  ;;  %p546_p1 = por %p545_p10, %p544_p5 }
  0x43   : > { %p547_p2 = pnand %p546_p1, %p540_p0 }
  0x45   : > { %550 = shalt.err (!%p547_p2)
}
  0x46   : > { %449 = dma.hbm_to_vmem [thread:$0]  (!%p763_p11), %s761_s28, 256, %s767_s8, %s197_s14  }
  0x47   : > { %p890_p7 = scmp.ne.s32.totalorder %s881_s26, 0 }
  0x48   : > { %s797_s15 = sand.u32 (!%p890_p7), 1, %s613_s19   ;;  %p891_p3 = scmp.ne.s32.totalorder (!%p890_p7), %s879_s24, 0 }
  0x49   : > { %217 = sbr.rel (%p890_p7) target bundleno = 423 (0x1a7), region = 40  ;;  %s424_s16 = sshll.u32 (!%p890_p7), %s797_s15, 4 }
  0x4a   : > { %s220_s17 = scalar_lea.sflag (!%p890_p7), [#allocation3], %s797_s15  ;;  %s223_s23 = scalar_lea.vmem (!%p890_p7), [#allocation2], %s424_s16 }
  0x50   : > { %596 = dma.done.wait (%p891_p3), %s220_s17, 256  }
  0x51   : > { %598 = vsyncadd (%p891_p3), %s220_s17, 4294967040  ;;  %p892_p11 = scmp.eq.s32.totalorder %s677_s22, 0 }
  0x53   : > { %600 = dma.done.wait (%p892_p11), [#allocation6], 256   ;;  %p893_p4 = pmov %p892_p11 }
  0x54   : > { %v262_v0 = vlaneseq  ;;  %v254_v4 = vld [vmem:[%s223_s23] sm:$0xff]  ;;  %v255_v5 = vld [vmem:[%s223_s23 + $0x8] sm:$0xff]  ;;  %s433_s9 = sshll.u32 %s677_s22, 8  ;;  %s253_s10 = scalar_lea.vmem [#allocation7], %s424_s16 }
  0x55   : > { %602 = vsyncadd (%p893_p4), [#allocation6], 4294967040  ;;  %v256_v6 = vld [vmem:[#allocation5] sm:$0xff]  ;;  %v257_v7 = vld [vmem:[#allocation5 + $0x8] sm:$0xff]  ;;  %s336_s6 = sshll.u32 %s253_s10, 4  ;;  %s826_s7 = scalar_lea.hbm %s875_s5, %s433_s9  ;;  %s828_s6 = int_to_ptr.vmem [resolvable:$true] %s336_s6 }
  0x56   : > { %v263_v1 = vshrl.u32 %v262_v0, 7  ;;  %v258_v8 = vadd.f32 %v256_v6, %v254_v4  ;;  %v260_v9 = vld [vmem:[%s872_s2] sm:$0x3]  ;;  %v259_v10 = vadd.f32 %v257_v7, %v255_v5  ;;  %s322_s22 = scalar_lea.sflag [#allocation4], %s797_s15  ;;  %s551_s17 = scalar_lea.vmem %s828_s6, 256 }
  0x57   : > { %v274_v26 = vld [vmem:[%s873_s3] sm:$0x3]  ;;  %p552_p6 = scmp.ne.s32.totalorder %s828_s6, %s551_s17  ;;  %s625_s16 = smov [#allocation7]  }
  0x58   : > { %v264_v2 = vsub.s32 0, %v263_v1  ;;  %v268_v3 = vsub.s32 1, %v263_v1  ;;  %v275_v27 = vld [vmem:[%s874_s4] sm:$0x3]  ;;  %s555_s23 = sshll.u32 %s625_s16, 4  ;;  %s556_s23 = int_to_ptr.vmem [resolvable:$false] %s555_s23 }
  0x59   : > { %p553_p9 = pnand %p552_p6, %p748_p8  ;;  %s557_s26 = scalar_lea.vmem %s556_s23, 512 }
  0x5a   : > { %v265_v11 = vrot.slane %v260_v9, %v264_v2  ;;  %v269_v12 = vrot.slane %v260_v9, %v268_v3  ;;  %v297_v28 = vrot.slane %v274_v26, %v264_v2  ;;  %v301_v29 = vrot.slane %v274_v26, %v268_v3  ;;  %p558_p13 = scmp.lt.s32.totalorder %s828_s6, %s556_s23  ;;  %p559_p0 = scmp.lt.s32.totalorder %s557_s26, %s551_s17 }
  0x5b   : > { %v310_v31 = vrot.slane %v275_v27, %v264_v2  ;;  %v314_v32 = vrot.slane %v275_v27, %v268_v3  ;;  %p554_p12 = pneg %p553_p9 }
  0x5c   : > { %v272_v13 = vadd.f32 %v265_v11, %v258_v8  ;;  %v273_v14 = vadd.f32 %v269_v12, %v259_v10  ;;  %p560_p5 = por %p559_p0, %p558_p13 }
  0x5e   : > { %v276_v15 = vadd.f32 %v273_v14, %v272_v13  ;;  %p561_p10 = pnand %p560_p5, %p554_p12 }
  0x60   : > { %277 = vadd.xlane.f32.xlu0 %v276_v15 }
  0xed   : > { %v278_v16 = vpop.xlane.xlu0 %277 }
  0xee   : > { %v280_v17 = vmul.f32 0.00390625, %v278_v16 }
  0xf0   : > { %v281_v18 = vsub.f32 %v272_v13, %v280_v17  ;;  %v282_v19 = vsub.f32 %v273_v14, %v280_v17 }
  0xf2   : > { %v283_v20 = vmul.f32 %v281_v18, %v281_v18  ;;  %v284_v21 = vmul.f32 %v282_v19, %v282_v19 }
  0xf4   : > { %v285_v22 = vadd.f32 %v284_v21, %v283_v20 }
  0xf6   : > { %286 = vadd.xlane.f32.xlu0 %v285_v22 }
 0x183   : > { %v287_v23 = vpop.xlane.xlu0 %286 }
 0x184   : > { %v288_v24 = vmul.f32 0.00390625, %v287_v23 }
 0x186   : > { %v289_v25 = vadd.f32 1e-12, %v288_v24 }
 0x188   : > { %491 = vrsqrt.f32 %v289_v25 }
 0x192   : > { %v492_v30 = vpop.eup %491 }
 0x193   : > { %v291_v33 = vmul.f32 %v492_v30, %v281_v18  ;;  %v292_v34 = vmul.f32 %v492_v30, %v282_v19 }
 0x195   : > { %v304_v35 = vmul.f32 %v297_v28, %v291_v33  ;;  %v305_v36 = vmul.f32 %v301_v29, %v292_v34 }
 0x197   : > { %v317_v37 = vadd.f32 %v310_v31, %v304_v35  ;;  %v318_v38 = vadd.f32 %v314_v32, %v305_v36 }
 0x199   : > { %319 = vst [vmem:[%s253_s10] sm:$0xff] %v317_v37  ;;  %320 = vst [vmem:[%s253_s10 + $0x8] sm:$0xff] %v318_v38 }
 0x19a   : > { %564 = shalt.err (!%p561_p10)
}
 0x19b   : > { %s565_s15 = scalar_lea.hbm %s826_s7, 256  ;;  %s569_s8 = scalar_lea.hbm %s875_s5, 512 }
 0x19c   : > { %p566_p1 = scmp.ne.s32.totalorder %s826_s7, %s565_s15  ;;  %p570_p3 = scmp.lt.u32.totalorder %s826_s7, %s875_s5 }
 0x19d   : > { %p571_p11 = scmp.lt.u32.totalorder %s569_s8, %s565_s15  ;;  %p573_p6 = scmp.lt.u32.totalorder %s565_s15, %s826_s7 }
 0x19e   : > { %p567_p2 = pnand %p566_p1, %p748_p8 }
 0x19f   : > { %p572_p4 = por %p571_p11, %p570_p3 }
 0x1a0   : > { %p568_p7 = pneg %p567_p2 }
 0x1a1   : > { %p574_p9 = por %p573_p6, %p572_p4 }
 0x1a3   : > { %p575_p12 = pnand %p574_p9, %p568_p7 }
 0x1a5   : > { %578 = shalt.err (!%p575_p12)
}
 0x1a6   : > { %440 = dma.vmem_to_hbm [thread:$0]  (%p748_p8), %s828_s6, 256, %s826_s7, %s322_s22  }
 0x1a7 PF: > { %s348_s9 = sand.u32 1, %s609_s18   ;;  %p894_p13 = scmp.ne.s32.totalorder %s880_s25, 0 }
 0x1a8   : > { %p895_p0 = scmp.ge.s32.totalorder %s621_s21, 2  ;;  %s349_s10 = scalar_lea.sflag [#allocation4], %s348_s9 }
 0x1aa   : > { %p451_p5 = pnand %p895_p0, %p894_p13 }
 0x1ac   : > { %604 = dma.done.wait (!%p451_p5), %s349_s10, 256  }
 0x1ad   : > { %606 = vsyncadd (!%p451_p5), %s349_s10, 4294967040  ;;  %p19_p10 = scmp.ge.s32.totalorder %s704_s29, 4   ;;  %s896_s18 = smov %s613_s19 }
 0x1ae   : > { %s897_s19 = smov %s617_s20  ;;  %s898_s20 = smov %s740_s27 }
 0x1af   : > { %s899_s21 = smov %s704_s29  ;;  %21 = sbr.rel (!%p19_p10) target bundleno = 6 (0x6), region = 89 }
 0x1b6   :  { %354 = vsyncpa [#allocation3], 1 }
 0x1b7   :  { %356 = vsyncpa [#allocation3 + $0x1], 1 }
 0x1b8   :  { %357 = vsyncpa [#allocation6], 1 }
 0x1b9   :  { %358 = vsyncpa [#allocation4], 1 }
 0x1ba   :  { %360 = vsyncpa [#allocation4 + $0x1], 1 }

</bundles_post_ra>
